<compile_context>
chip_gen: v5e
topology: v5e:2x2
jax: 0.10.0
libtpu: 0.0.40
codegen_flags: <defaults>
</compile_context>

<pallas_src>
import jax
import jax.numpy as jnp
from jax.experimental import pallas as pl
from jax.experimental.pallas import tpu as pltpu

D_IN = 30       # logical input features (torch Linear(30, 64))
D_IN_PAD = 32   # zero-padded, sublane-aligned K for the first matmul
D_H1 = 64
D_H2 = 32
D_OUT = 3


def edgenet_kernel(x_ref, w1_ref, b1_ref, w2_ref, b2_ref, w3_ref, b3_ref, o_ref):
    # Layer 1: Linear(30->64) (K padded to 32 with zeros) + ReLU.
    # bf16 operands on the MXU, f32 accumulation / elementwise.
    h1 = jnp.dot(x_ref[...], w1_ref[...], preferred_element_type=jnp.float32)
    h1 = jnp.maximum(h1 + b1_ref[...], 0.0)
    # Layer 2: Linear(64->32) + ReLU
    h2 = jnp.dot(h1.astype(jnp.bfloat16), w2_ref[...],
                 preferred_element_type=jnp.float32)
    h2 = jnp.maximum(h2 + b2_ref[...], 0.0)
    # Layer 3: Linear(32->3) + sigmoid.  exp and the approx reciprocal both go to
    # the EUP, keeping VALU slots free.
    y = jnp.dot(h2.astype(jnp.bfloat16), w3_ref[...],
                preferred_element_type=jnp.float32)
    y = y + b3_ref[...]
    den = 1.0 + jnp.exp(-y)
    o_ref[...] = pl.reciprocal(den, approx=True).astype(o_ref.dtype)


def init_params(key):
    """Deterministic init matching torch.nn.Linear default (uniform(+-1/sqrt(fan_in))),
    with weights stored as (in_features, out_features), everything float32."""
    dims = [(D_IN, D_H1), (D_H1, D_H2), (D_H2, D_OUT)]
    params = {}
    keys = jax.random.split(key, 2 * len(dims))
    for idx, (fan_in, fan_out) in enumerate(dims):
        bound = 1.0 / jnp.sqrt(fan_in)
        w = jax.random.uniform(keys[2 * idx], (fan_in, fan_out),
                               minval=-bound, maxval=bound, dtype=jnp.float32)
        b = jax.random.uniform(keys[2 * idx + 1], (1, fan_out),
                               minval=-bound, maxval=bound, dtype=jnp.float32)
        params[f"w{idx + 1}"] = w
        params[f"b{idx + 1}"] = b
    return params


def prepare_params(params):
    """Cast weights to bf16 (MXU-native, halves weight HBM traffic) and zero-pad the
    first layer's K dim 30 -> 32.  Biases stay float32."""
    w1 = jnp.pad(params["w1"], ((0, D_IN_PAD - D_IN), (0, 0))).astype(jnp.bfloat16)
    return {
        "w1": w1,
        "b1": params["b1"].astype(jnp.float32),
        "w2": params["w2"].astype(jnp.bfloat16),
        "b2": params["b2"].astype(jnp.float32),
        "w3": params["w3"].astype(jnp.bfloat16),
        "b3": params["b3"].astype(jnp.float32),
    }


def edgenet_forward(x, prepared, *, batch_tile=512):
    """x: (N, 30) float32.  prepared: output of prepare_params()."""
    N, f = x.shape
    assert f == D_IN, f"expected {D_IN} input features, got {f}"

    # Tile must be a multiple of 16 (bf16 sublane packing); don't exceed what the
    # (padded) batch needs.
    bt = max(16, min(int(batch_tile), pl.cdiv(N, 16) * 16))
    bt = (bt // 16) * 16
    n_pad = pl.cdiv(N, bt) * bt

    # Cast to bf16 and zero-pad: features 30 -> 32, batch N -> n_pad.
    x_p = jnp.pad(x.astype(jnp.bfloat16),
                  ((0, n_pad - N), (0, D_IN_PAD - D_IN)))

    w1, b1 = prepared["w1"], prepared["b1"]
    w2, b2 = prepared["w2"], prepared["b2"]
    w3, b3 = prepared["w3"], prepared["b3"]

    def full(arr):
        nd = arr.ndim
        return pl.BlockSpec(arr.shape, lambda i, _nd=nd: (0,) * _nd)

    weight_bytes = (w1.size + w2.size + w3.size) * 2 + (b1.size + b2.size + b3.size) * 4
    cost = pl.CostEstimate(
        flops=2 * n_pad * (D_IN * D_H1 + D_H1 * D_H2 + D_H2 * D_OUT),
        transcendentals=n_pad * D_OUT,
        bytes_accessed=n_pad * (D_IN_PAD * 2 + D_OUT * 4) + weight_bytes,
    )

    out = pl.pallas_call(
        edgenet_kernel,
        out_shape=jax.ShapeDtypeStruct((n_pad, D_OUT), jnp.float32),
        grid_spec=pltpu.PrefetchScalarGridSpec(
            num_scalar_prefetch=0,
            grid=(n_pad // bt,),
            in_specs=[
                pl.BlockSpec((bt, D_IN_PAD), lambda i: (i, 0)),  # x: tiled over batch
                full(w1), full(b1),
                full(w2), full(b2),
                full(w3), full(b3),
            ],
            out_specs=pl.BlockSpec((bt, D_OUT), lambda i: (i, 0)),
        ),
        compiler_params=pltpu.CompilerParams(
            dimension_semantics=("parallel",),
        ),
        cost_estimate=cost,
    )(x_p, w1, b1, w2, b2, w3, b3)

    return out[:N]


def edgenet_reference(x, params, *, emulate_bf16=False):
    """Pure-JAX reference.  emulate_bf16=True mirrors the kernel's bf16 dot operands."""
    cast = (lambda a: a.astype(jnp.bfloat16)) if emulate_bf16 else (lambda a: a)
    h = jnp.dot(cast(x), cast(params["w1"]), preferred_element_type=jnp.float32)
    h = jnp.maximum(h + params["b1"], 0.0)
    h = jnp.dot(cast(h), cast(params["w2"]), preferred_element_type=jnp.float32)
    h = jnp.maximum(h + params["b2"], 0.0)
    y = jnp.dot(cast(h), cast(params["w3"]), preferred_element_type=jnp.float32)
    y = y + params["b3"]
    return jax.nn.sigmoid(y)


if __name__ == "__main__":
    key = jax.random.PRNGKey(0)
    k_param, k_x = jax.random.split(key)

    params = init_params(k_param)
    prepared = prepare_params(params)

    # Small-but-representative batch: grid of 2 tiles (even length -> both v7x cores busy).
    N = 256
    x = jax.random.normal(k_x, (N, D_IN), dtype=jnp.float32)

    out = edgenet_forward(x, prepared, batch_tile=128)
    out = jax.block_until_ready(out)
    assert out.shape == (N, D_OUT)

    # Tight check vs. a reference that uses the same bf16 dot operands ...
    ref_bf16 = edgenet_reference(x, params, emulate_bf16=True)
    assert jnp.allclose(out, ref_bf16, atol=2e-3, rtol=2e-3), "mismatch vs bf16 reference"
    # ... and a loose semantic check vs. the full-f32 PyTorch-equivalent math.
    ref_f32 = edgenet_reference(x, params, emulate_bf16=False)
    assert jnp.allclose(out, ref_f32, atol=5e-2, rtol=5e-2), "mismatch vs f32 reference"

    print("KERNEL_OK")
</pallas_src>

<mosaic_0001>
module attributes {stable_mosaic.version = 11 : i64} {
  func.func @edgenet_kernel(%arg0: i32, %arg1: memref<128x32xbf16, #tpu.memory_space<vmem>>, %arg2: memref<32x64xbf16, #tpu.memory_space<vmem>>, %arg3: memref<1x64xf32, #tpu.memory_space<vmem>>, %arg4: memref<64x32xbf16, #tpu.memory_space<vmem>>, %arg5: memref<1x32xf32, #tpu.memory_space<vmem>>, %arg6: memref<32x3xbf16, #tpu.memory_space<vmem>>, %arg7: memref<1x3xf32, #tpu.memory_space<vmem>>, %arg8: memref<128x3xf32, #tpu.memory_space<vmem>>) attributes {dimension_semantics = [#tpu.dimension_semantics<parallel>], iteration_bounds = array<i64: 2>, scalar_prefetch = 0 : i64, scratch_operands = 0 : i64, tpu.core_type = #tpu.core_type<tc>, window_params = [{transform_indices = @transform_0, window_bounds = array<i64: 128, 32>}, {pipeline_mode = #tpu.pipeline_mode<synchronous>, transform_indices = @transform_1, window_bounds = array<i64: 32, 64>}, {pipeline_mode = #tpu.pipeline_mode<synchronous>, transform_indices = @transform_2, window_bounds = array<i64: 1, 64>}, {pipeline_mode = #tpu.pipeline_mode<synchronous>, transform_indices = @transform_3, window_bounds = array<i64: 64, 32>}, {pipeline_mode = #tpu.pipeline_mode<synchronous>, transform_indices = @transform_4, window_bounds = array<i64: 1, 32>}, {pipeline_mode = #tpu.pipeline_mode<synchronous>, transform_indices = @transform_5, window_bounds = array<i64: 32, 3>}, {pipeline_mode = #tpu.pipeline_mode<synchronous>, transform_indices = @transform_6, window_bounds = array<i64: 1, 3>}, {transform_indices = @transform_7, window_bounds = array<i64: 128, 3>}]} {
    %c0 = arith.constant 0 : index
    %c0_0 = arith.constant 0 : index
    %0 = vector.load %arg1[%c0, %c0_0] : memref<128x32xbf16, #tpu.memory_space<vmem>>, vector<128x32xbf16>
    %c0_1 = arith.constant 0 : index
    %c0_2 = arith.constant 0 : index
    %1 = vector.load %arg2[%c0_1, %c0_2] : memref<32x64xbf16, #tpu.memory_space<vmem>>, vector<32x64xbf16>
    %cst = arith.constant dense<0.000000e+00> : vector<128x64xf32>
    %2 = tpu.matmul %0, %1, %cst {dimension_numbers = #tpu.dot_dimension_numbers<[1], [0], [0], [1], [0, 0, 1, 1], [], []>} : vector<128x32xbf16>, vector<32x64xbf16>, vector<128x64xf32> -> vector<128x64xf32>
    %c0_3 = arith.constant 0 : index
    %c0_4 = arith.constant 0 : index
    %3 = vector.load %arg3[%c0_3, %c0_4] : memref<1x64xf32, #tpu.memory_space<vmem>>, vector<1x64xf32>
    %4 = vector.broadcast %3 : vector<1x64xf32> to vector<128x64xf32>
    %5 = arith.addf %2, %4 : vector<128x64xf32>
    %cst_5 = arith.constant 0.000000e+00 : f32
    %6 = vector.broadcast %cst_5 : f32 to vector<128x64xf32>
    %7 = arith.maximumf %5, %6 : vector<128x64xf32>
    %8 = arith.truncf %7 : vector<128x64xf32> to vector<128x64xbf16>
    %c0_6 = arith.constant 0 : index
    %c0_7 = arith.constant 0 : index
    %9 = vector.load %arg4[%c0_6, %c0_7] : memref<64x32xbf16, #tpu.memory_space<vmem>>, vector<64x32xbf16>
    %cst_8 = arith.constant dense<0.000000e+00> : vector<128x32xf32>
    %10 = tpu.matmul %8, %9, %cst_8 {dimension_numbers = #tpu.dot_dimension_numbers<[1], [0], [0], [1], [0, 0, 1, 1], [], []>} : vector<128x64xbf16>, vector<64x32xbf16>, vector<128x32xf32> -> vector<128x32xf32>
    %c0_9 = arith.constant 0 : index
    %c0_10 = arith.constant 0 : index
    %11 = vector.load %arg5[%c0_9, %c0_10] : memref<1x32xf32, #tpu.memory_space<vmem>>, vector<1x32xf32>
    %12 = vector.broadcast %11 : vector<1x32xf32> to vector<128x32xf32>
    %13 = arith.addf %10, %12 : vector<128x32xf32>
    %cst_11 = arith.constant 0.000000e+00 : f32
    %14 = vector.broadcast %cst_11 : f32 to vector<128x32xf32>
    %15 = arith.maximumf %13, %14 : vector<128x32xf32>
    %16 = arith.truncf %15 : vector<128x32xf32> to vector<128x32xbf16>
    %c0_12 = arith.constant 0 : index
    %c0_13 = arith.constant 0 : index
    %17 = vector.load %arg6[%c0_12, %c0_13] : memref<32x3xbf16, #tpu.memory_space<vmem>>, vector<32x3xbf16>
    %cst_14 = arith.constant dense<0.000000e+00> : vector<128x3xf32>
    %18 = tpu.matmul %16, %17, %cst_14 {dimension_numbers = #tpu.dot_dimension_numbers<[1], [0], [0], [1], [0, 0, 1, 1], [], []>} : vector<128x32xbf16>, vector<32x3xbf16>, vector<128x3xf32> -> vector<128x3xf32>
    %c0_15 = arith.constant 0 : index
    %c0_16 = arith.constant 0 : index
    %19 = vector.load %arg7[%c0_15, %c0_16] : memref<1x3xf32, #tpu.memory_space<vmem>>, vector<1x3xf32>
    %20 = vector.broadcast %19 : vector<1x3xf32> to vector<128x3xf32>
    %21 = arith.addf %18, %20 : vector<128x3xf32>
    %cst_17 = arith.constant 0.000000e+00 : f32
    %22 = vector.broadcast %cst_17 : f32 to vector<128x3xf32>
    %23 = arith.subf %22, %21 : vector<128x3xf32>
    %24 = math.exp %23 : vector<128x3xf32>
    %cst_18 = arith.constant 1.000000e+00 : f32
    %25 = vector.broadcast %cst_18 : f32 to vector<128x3xf32>
    %26 = arith.addf %25, %24 : vector<128x3xf32>
    %27 = tpu.reciprocal %26 {approx = true} : vector<128x3xf32> -> vector<128x3xf32>
    %c0_19 = arith.constant 0 : index
    %c0_20 = arith.constant 0 : index
    %28 = vector.load %arg8[%c0_19, %c0_20] : memref<128x3xf32, #tpu.memory_space<vmem>>, vector<128x3xf32>
    tpu.vector_store %arg8[%c0_19, %c0_20], %27 {strides = array<i32>} : memref<128x3xf32, #tpu.memory_space<vmem>>, vector<128x3xf32>,
    return
  }
  func.func @transform_0(%arg0: i32) -> (i32, i32) {
    %c0_i32 = arith.constant 0 : i32
    %c0_i32_0 = arith.constant 0 : i32
    return %arg0, %c0_i32 : i32, i32
  }
  func.func @transform_1(%arg0: i32) -> (i32, i32) {
    %c0_i32 = arith.constant 0 : i32
    %c0_i32_0 = arith.constant 0 : i32
    %c0_i32_1 = arith.constant 0 : i32
    return %c0_i32, %c0_i32_0 : i32, i32
  }
  func.func @transform_2(%arg0: i32) -> (i32, i32) {
    %c0_i32 = arith.constant 0 : i32
    %c0_i32_0 = arith.constant 0 : i32
    %c0_i32_1 = arith.constant 0 : i32
    return %c0_i32, %c0_i32_0 : i32, i32
  }
  func.func @transform_3(%arg0: i32) -> (i32, i32) {
    %c0_i32 = arith.constant 0 : i32
    %c0_i32_0 = arith.constant 0 : i32
    %c0_i32_1 = arith.constant 0 : i32
    return %c0_i32, %c0_i32_0 : i32, i32
  }
  func.func @transform_4(%arg0: i32) -> (i32, i32) {
    %c0_i32 = arith.constant 0 : i32
    %c0_i32_0 = arith.constant 0 : i32
    %c0_i32_1 = arith.constant 0 : i32
    return %c0_i32, %c0_i32_0 : i32, i32
  }
  func.func @transform_5(%arg0: i32) -> (i32, i32) {
    %c0_i32 = arith.constant 0 : i32
    %c0_i32_0 = arith.constant 0 : i32
    %c0_i32_1 = arith.constant 0 : i32
    return %c0_i32, %c0_i32_0 : i32, i32
  }
  func.func @transform_6(%arg0: i32) -> (i32, i32) {
    %c0_i32 = arith.constant 0 : i32
    %c0_i32_0 = arith.constant 0 : i32
    %c0_i32_1 = arith.constant 0 : i32
    return %c0_i32, %c0_i32_0 : i32, i32
  }
  func.func @transform_7(%arg0: i32) -> (i32, i32) {
    %c0_i32 = arith.constant 0 : i32
    %c0_i32_0 = arith.constant 0 : i32
    return %arg0, %c0_i32 : i32, i32
  }
}

</mosaic_0001>

<bundles_post_ra>
// kernel: tpu_custom_call.1
= control target key start
LH: loop header
LB: loop body
LE: loop exit
PB: predicated region body
PF: predicated region fallthrough
CT: control target
= control target key end

     0   :  { %s1083_s24 = smov 0   ;;  %s1231_s0 = inlined_call_operand.vmem [shape: bf16[256,32], index: 0, kind: input, shape index: {}]   ;;  %s1232_s1 = inlined_call_operand.vmem [shape: bf16[32,64], index: 1, kind: input, shape index: {}]   ;;  %s1233_s2 = inlined_call_operand.vmem [shape: f32[1,64], index: 2, kind: input, shape index: {}]   ;;  %s1234_s3 = inlined_call_operand.vmem [shape: bf16[64,32], index: 3, kind: input, shape index: {}]   ;;  %s1235_s4 = inlined_call_operand.vmem [shape: f32[1,32], index: 4, kind: input, shape index: {}]   ;;  %s1236_s5 = inlined_call_operand.vmem [shape: bf16[32,3], index: 5, kind: input, shape index: {}]   ;;  %s1237_s6 = inlined_call_operand.vmem [shape: f32[1,3], index: 6, kind: input, shape index: {}]   ;;  %s1238_s7 = inlined_call_operand.vmem [shape: f32[256,3], index: 7, kind: output, shape index: {}]  }
   0x1 LB: > { %s837_s25 = sadd.s32 4294967295, %s1041_s24   ;;  %p841_p0 = scmp.ge.s32.totalorder %s1041_s24, 1  ;;  %s1041_s24 = sphi %s1083_s24, %s17_s24  }
   0x2   : > { %p238_p1 = scmp.lt.s32.totalorder %s1041_s24, 3 }
   0x4   : > { %p239_p2 = pnand %p841_p0, %p238_p1 }
   0x5   : > { %s842_s28 = sshll.u32 (!%p239_p2), %s837_s25, 4 }
   0x6   : > { %242 = sbr.rel (%p239_p2) target bundleno = 580 (0x244), region = 48  ;;  %p271_p3 = scmp.lt.s32.totalorder (!%p239_p2), %s842_s28, 31 }
   0xb   : > { %v945_v0 = vld [vmem:[%s1232_s1 + $0x8] sm:$0xff]  ;;  %v944_v1 = vld [vmem:[%s1232_s1] sm:$0xff]  ;;  %s1240_s28 = smov (!%p271_p3, %s842_s28), 31  ;;  %vm359_vm0 = vcmask 261120   ;;  %v949_v9 = vld [vmem:[%s1234_s3 + $0x18] sm:$0xff]  ;;  %vm493_vm1 = vcmask 523264  }
   0xc   : > { %390 = vmatpush.bf16.msra.mxu0 %v945_v0  ;;  %952 = vmatpush.bf16.msra.mxu3 %v945_v0  ;;  %s843_s8 = sshll.u32 %s1240_s28, 2  ;;  %v948_v11 = vld [vmem:[%s1234_s3 + $0x10] sm:$0xff]  ;;  %v947_v12 = vld [vmem:[%s1234_s3 + $0x8] sm:$0xff]  ;;  %v946_v13 = vld [vmem:[%s1234_s3] sm:$0xff]  ;;  %s845_s9 = sshll.u32 %s1240_s28, 3  ;;  %vm764_vm2 = vcmask 23552  }
   0xd   : > { %s274_s11 = scalar_lea.vmem %s1231_s0, %s843_s8  ;;  %522 = vmatpush.bf16.msra.mxu1 %v949_v9  ;;  %v1126_v15 = vld [vmem:[%s1233_s2] ss:$0 sm:$0xff]  ;;  %s1181_s12 = scalar_lea.vmem %s1238_s7, %s845_s9 }
   0xe   : > { %v936_v2 = vld [vmem:[%s274_s11] sm:$0xff]  ;;  %v937_v3 = vld [vmem:[%s274_s11 + $0x8] sm:$0xff]  ;;  %v938_v4 = vld [vmem:[%s274_s11 + $0x10] sm:$0xff] }
   0xf   : > { %v939_v5 = vld [vmem:[%s274_s11 + $0x18] sm:$0xff]  ;;  %v940_v6 = vld [vmem:[%s274_s11 + $0x20] sm:$0xff]  ;;  %v941_v8 = vld [vmem:[%s274_s11 + $0x28] sm:$0xff] }
  0x10   : > { %391 = vmatpush.bf16.msra.mxu0 %v944_v1  ;;  %953 = vmatpush.bf16.msra.mxu3 %v944_v1  ;;  %v943_v7 = vld [vmem:[%s274_s11 + $0x38] sm:$0xff]  ;;  %v942_v10 = vld [vmem:[%s274_s11 + $0x30] sm:$0xff] }
  0x11   : > { %523 = vmatpush.bf16.msra.mxu1 %v948_v11 }
  0x13   : > { %886 = vmatmul.msk.bf16.vlgmr.msra.gmra.mxu0 %vm359_vm0, %v936_v2  ;;  %893 = vmatmul.msk.bf16.vlgmr.msra.gmra.mxu3 %vm359_vm0, %v943_v7  ;;  %v951_v2 = vld [vmem:[%s1236_s5 + $0x8] sm:$0xff] }
  0x14   : > { %954 = vmatpush.bf16.msrb.mxu3 %v949_v9  ;;  %641 = vmatpush.bf16.msra.mxu2 %v951_v2 }
  0x15   : > { %524 = vmatpush.bf16.msra.mxu1 %v947_v12 }
  0x18   : > { %955 = vmatpush.bf16.msrb.mxu3 %v948_v11 }
  0x19   : > { %525 = vmatpush.bf16.msra.mxu1 %v946_v13 }
  0x1c   : > { %956 = vmatpush.bf16.msrb.mxu3 %v947_v12 }
  0x20   : > { %957 = vmatpush.bf16.msrb.mxu3 %v946_v13 }
  0x23   : > { %887 = vmatmul.msk.bf16.gmra.mxu0 %vm359_vm0, %v937_v3 }
  0x24   : > { %958 = vmatpush.bf16.msra.mxu3 %v951_v2  ;;  %v1172_v2 = vld [vmem:[%s1237_s6] ss:$0 sm:$0xff] }
  0x33   : > { %888 = vmatmul.msk.bf16.gmra.mxu0 %vm359_vm0, %v938_v4 }
  0x43   : > { %889 = vmatmul.msk.bf16.gmra.mxu0 %vm359_vm0, %v939_v5  ;;  %v950_v5 = vld [vmem:[%s1236_s5] sm:$0xff] }
  0x44   : > { %642 = vmatpush.bf16.msra.mxu2 %v950_v5  ;;  %959 = vmatpush.bf16.msra.mxu3 %v950_v5 }
  0x53   : > { %890 = vmatmul.msk.bf16.gmra.mxu0 %vm359_vm0, %v940_v6 }
  0x63   : > { %891 = vmatmul.msk.bf16.gmra.mxu0 %vm359_vm0, %v941_v8 }
  0x73   : > { %892 = vmatmul.msk.bf16.gmra.mxu0 %vm359_vm0, %v942_v10  ;;  %v969_v10 = vld [vmem:[%s1235_s4] ss:$0 sm:$0xff] }
  0x90   : > { %v393_v14 = vpop.f32.mrf.mxu0 }
  0x91   : > { %v394_v16 = vadd.f32 %v1126_v15, %v393_v14 }
  0x93   : > { %v433_v19 = vmax.f32 %v394_v16, 0.0 }
  0x96   : > { %v428_v60 = vpop.f32.mrf.mxu3 }
  0x97   : > { %v429_v3 = vadd.f32 %v1126_v15, %v428_v60 }
  0x98   : > { %v395_v17 = vpop.f32.mrf.mxu0 }
  0x99   : > { %v396_v18 = vadd.f32 %v1126_v15, %v395_v17  ;;  %v447_v6 = vmax.f32 %v429_v3, 0.0 }
  0x9b   : > { %v434_v20 = vmax.f32 %v396_v18, 0.0 }
  0x9d   : > { %v449_v21 = vpack.c.bf16 %v434_v20, %v433_v19 }
  0x9e   : > { %v430_v1 = vpop.f32.mrf.mxu3 }
  0x9f   : > { %910 = vmatmul.msk.bf16.vlgmr.msra.gmra.mxu1 %vm493_vm1, %v449_v21  ;;  %v431_v4 = vadd.f32 %v1126_v15, %v430_v1 }
  0xa0   : > { %v398_v22 = vpop.f32.mrf.mxu0 }
  0xa1   : > { %v399_v23 = vadd.f32 %v1126_v15, %v398_v22  ;;  %v448_v7 = vmax.f32 %v431_v4, 0.0 }
  0xa3   : > { %v435_v26 = vmax.f32 %v399_v23, 0.0  ;;  %v456_v8 = vpack.c.bf16 %v448_v7, %v447_v6 }
  0xa8   : > { %v400_v24 = vpop.f32.mrf.mxu0 }
  0xa9   : > { %v401_v25 = vadd.f32 %v1126_v15, %v400_v24 }
  0xab   : > { %v436_v27 = vmax.f32 %v401_v25, 0.0 }
  0xad   : > { %v450_v28 = vpack.c.bf16 %v436_v27, %v435_v26 }
  0xaf   : > { %911 = vmatmul.msk.bf16.gmra.mxu1 %vm493_vm1, %v450_v28 }
  0xb0   : > { %v403_v29 = vpop.f32.mrf.mxu0 }
  0xb1   : > { %v404_v30 = vadd.f32 %v1126_v15, %v403_v29 }
  0xb3   : > { %v437_v33 = vmax.f32 %v404_v30, 0.0 }
  0xb8   : > { %v405_v31 = vpop.f32.mrf.mxu0 }
  0xb9   : > { %v406_v32 = vadd.f32 %v1126_v15, %v405_v31 }
  0xbb   : > { %v438_v34 = vmax.f32 %v406_v32, 0.0 }
  0xbd   : > { %v451_v35 = vpack.c.bf16 %v438_v34, %v437_v33 }
  0xbf   : > { %912 = vmatmul.msk.bf16.gmra.mxu1 %vm493_vm1, %v451_v35 }
  0xc0   : > { %v408_v36 = vpop.f32.mrf.mxu0 }
  0xc1   : > { %v409_v37 = vadd.f32 %v1126_v15, %v408_v36 }
  0xc3   : > { %v439_v40 = vmax.f32 %v409_v37, 0.0 }
  0xc8   : > { %v410_v38 = vpop.f32.mrf.mxu0 }
  0xc9   : > { %v411_v39 = vadd.f32 %v1126_v15, %v410_v38 }
  0xcb   : > { %v440_v41 = vmax.f32 %v411_v39, 0.0 }
  0xcd   : > { %v452_v42 = vpack.c.bf16 %v440_v41, %v439_v40 }
  0xcf   : > { %913 = vmatmul.msk.bf16.gmra.mxu1 %vm493_vm1, %v452_v42 }
  0xd0   : > { %v413_v43 = vpop.f32.mrf.mxu0 }
  0xd1   : > { %v414_v44 = vadd.f32 %v1126_v15, %v413_v43 }
  0xd3   : > { %v441_v47 = vmax.f32 %v414_v44, 0.0 }
  0xd8   : > { %v415_v45 = vpop.f32.mrf.mxu0 }
  0xd9   : > { %v416_v46 = vadd.f32 %v1126_v15, %v415_v45 }
  0xdb   : > { %v442_v48 = vmax.f32 %v416_v46, 0.0 }
  0xdd   : > { %v453_v49 = vpack.c.bf16 %v442_v48, %v441_v47 }
  0xdf   : > { %914 = vmatmul.msk.bf16.gmra.mxu1 %vm493_vm1, %v453_v49 }
  0xe0   : > { %v418_v50 = vpop.f32.mrf.mxu0 }
  0xe1   : > { %v419_v51 = vadd.f32 %v1126_v15, %v418_v50 }
  0xe3   : > { %v443_v54 = vmax.f32 %v419_v51, 0.0 }
  0xe8   : > { %v420_v52 = vpop.f32.mrf.mxu0 }
  0xe9   : > { %v421_v53 = vadd.f32 %v1126_v15, %v420_v52 }
  0xeb   : > { %v444_v55 = vmax.f32 %v421_v53, 0.0 }
  0xed   : > { %v454_v56 = vpack.c.bf16 %v444_v55, %v443_v54 }
  0xef   : > { %915 = vmatmul.msk.bf16.gmra.mxu1 %vm493_vm1, %v454_v56 }
  0xf0   : > { %v423_v57 = vpop.f32.mrf.mxu0 }
  0xf1   : > { %v424_v58 = vadd.f32 %v1126_v15, %v423_v57 }
  0xf3   : > { %v445_v62 = vmax.f32 %v424_v58, 0.0 }
  0xf8   : > { %v425_v59 = vpop.f32.mrf.mxu0 }
  0xf9   : > { %v426_v61 = vadd.f32 %v1126_v15, %v425_v59 }
  0xfb   : > { %v446_v63 = vmax.f32 %v426_v61, 0.0 }
  0xfd   : > { %v455_v0 = vpack.c.bf16 %v446_v63, %v445_v62 }
  0xff   : > { %916 = vmatmul.msk.bf16.vlgmr.msrb.gmra.mxu3 %vm493_vm1, %v455_v0 }
 0x10f   : > { %917 = vmatmul.msk.bf16.gmra.mxu3 %vm493_vm1, %v456_v8 }
 0x11c   : > { %v527_v9 = vpop.f32.mrf.mxu1 }
 0x11d   : > { %v528_v11 = vadd.f32 %v969_v10, %v527_v9 }
 0x11f   : > { %v567_v14 = vmax.f32 %v528_v11, 0.0 }
 0x124   : > { %v529_v12 = vpop.f32.mrf.mxu1 }
 0x125   : > { %v530_v13 = vadd.f32 %v969_v10, %v529_v12 }
 0x127   : > { %v568_v15 = vmax.f32 %v530_v13, 0.0 }
 0x129   : > { %v583_v16 = vpack.c.bf16 %v568_v15, %v567_v14 }
 0x12b   : > { %926 = vmatmul.msk.bf16.vlgmr.msra.gmra.mxu2 %vm359_vm0, %v583_v16 }
 0x12c   : > { %v532_v17 = vpop.f32.mrf.mxu1 }
 0x12d   : > { %v533_v18 = vadd.f32 %v969_v10, %v532_v17 }
 0x12f   : > { %v569_v21 = vmax.f32 %v533_v18, 0.0 }
 0x134   : > { %v534_v19 = vpop.f32.mrf.mxu1 }
 0x135   : > { %v535_v20 = vadd.f32 %v969_v10, %v534_v19 }
 0x137   : > { %v570_v22 = vmax.f32 %v535_v20, 0.0 }
 0x139   : > { %v584_v23 = vpack.c.bf16 %v570_v22, %v569_v21 }
 0x13b   : > { %927 = vmatmul.msk.bf16.gmra.mxu2 %vm359_vm0, %v584_v23 }
 0x13c   : > { %v537_v24 = vpop.f32.mrf.mxu1 }
 0x13d   : > { %v538_v25 = vadd.f32 %v969_v10, %v537_v24 }
 0x13f   : > { %v571_v28 = vmax.f32 %v538_v25, 0.0 }
 0x144   : > { %v539_v26 = vpop.f32.mrf.mxu1 }
 0x145   : > { %v540_v27 = vadd.f32 %v969_v10, %v539_v26 }
 0x147   : > { %v572_v29 = vmax.f32 %v540_v27, 0.0 }
 0x149   : > { %v585_v30 = vpack.c.bf16 %v572_v29, %v571_v28 }
 0x14b   : > { %928 = vmatmul.msk.bf16.gmra.mxu2 %vm359_vm0, %v585_v30 }
 0x14c   : > { %v542_v31 = vpop.f32.mrf.mxu1 }
 0x14d   : > { %v543_v32 = vadd.f32 %v969_v10, %v542_v31 }
 0x14f   : > { %v573_v35 = vmax.f32 %v543_v32, 0.0 }
 0x154   : > { %v544_v33 = vpop.f32.mrf.mxu1 }
 0x155   : > { %v545_v34 = vadd.f32 %v969_v10, %v544_v33 }
 0x157   : > { %v574_v36 = vmax.f32 %v545_v34, 0.0 }
 0x159   : > { %v586_v37 = vpack.c.bf16 %v574_v36, %v573_v35 }
 0x15b   : > { %929 = vmatmul.msk.bf16.gmra.mxu2 %vm359_vm0, %v586_v37 }
 0x15c   : > { %v547_v38 = vpop.f32.mrf.mxu1 }
 0x15d   : > { %v548_v39 = vadd.f32 %v969_v10, %v547_v38 }
 0x15f   : > { %v575_v42 = vmax.f32 %v548_v39, 0.0 }
 0x164   : > { %v549_v40 = vpop.f32.mrf.mxu1 }
 0x165   : > { %v550_v41 = vadd.f32 %v969_v10, %v549_v40 }
 0x167   : > { %v576_v43 = vmax.f32 %v550_v41, 0.0 }
 0x169   : > { %v587_v44 = vpack.c.bf16 %v576_v43, %v575_v42 }
 0x16b   : > { %930 = vmatmul.msk.bf16.gmra.mxu2 %vm359_vm0, %v587_v44 }
 0x16c   : > { %v552_v45 = vpop.f32.mrf.mxu1 }
 0x16d   : > { %v553_v46 = vadd.f32 %v969_v10, %v552_v45 }
 0x16f   : > { %v577_v49 = vmax.f32 %v553_v46, 0.0 }
 0x174   : > { %v554_v47 = vpop.f32.mrf.mxu1 }
 0x175   : > { %v555_v48 = vadd.f32 %v969_v10, %v554_v47 }
 0x177   : > { %v578_v50 = vmax.f32 %v555_v48, 0.0 }
 0x179   : > { %v588_v51 = vpack.c.bf16 %v578_v50, %v577_v49 }
 0x17b   : > { %931 = vmatmul.msk.bf16.gmra.mxu2 %vm359_vm0, %v588_v51 }
 0x182   : > { %v557_v52 = vpop.f32.mrf.mxu3 }
 0x183   : > { %v558_v53 = vadd.f32 %v969_v10, %v557_v52 }
 0x185   : > { %v579_v56 = vmax.f32 %v558_v53, 0.0 }
 0x18a   : > { %v559_v54 = vpop.f32.mrf.mxu3 }
 0x18b   : > { %v560_v55 = vadd.f32 %v969_v10, %v559_v54 }
 0x18d   : > { %v580_v57 = vmax.f32 %v560_v55, 0.0 }
 0x18f   : > { %v589_v58 = vpack.c.bf16 %v580_v57, %v579_v56 }
 0x191   : > { %932 = vmatmul.msk.bf16.gmra.mxu2 %vm359_vm0, %v589_v58 }
 0x192   : > { %v562_v59 = vpop.f32.mrf.mxu3 }
 0x193   : > { %v563_v60 = vadd.f32 %v969_v10, %v562_v59 }
 0x195   : > { %v581_v63 = vmax.f32 %v563_v60, 0.0 }
 0x19a   : > { %v564_v61 = vpop.f32.mrf.mxu3 }
 0x19b   : > { %v565_v62 = vadd.f32 %v969_v10, %v564_v61 }
 0x19d   : > { %v582_v0 = vmax.f32 %v565_v62, 0.0 }
 0x19f   : > { %v590_v1 = vpack.c.bf16 %v582_v0, %v581_v63 }
 0x1a1   : > { %933 = vmatmul.msk.bf16.vlgmr.msra.gmra.mxu3 %vm359_vm0, %v590_v1 }
 0x1ae   : > { %v644_v3 = vpop.f32.mrf.mxu2 }
 0x1af   : > { %v645_v4 = vadd.f32 %v1172_v2, %v644_v3 }
 0x1b1   : > { %v684_v5 = vsub.f32 0.0, %v645_v4 }
 0x1b3   : > { %v700_v6 = vmul.f32 1.442695, %v684_v5 }
 0x1b5   : > { %971 = vpow2.f32 %v700_v6 }
 0x1b6   : > { %v646_v7 = vpop.f32.mrf.mxu2 }
 0x1b7   : > { %v647_v8 = vadd.f32 %v1172_v2, %v646_v7 }
 0x1b9   : > { %v685_v9 = vsub.f32 0.0, %v647_v8 }
 0x1bb   : > { %v972_v10 = vpop.eup %971  ;;  %v702_v11 = vmul.f32 1.442695, %v685_v9 }
 0x1bc   : > { %v732_v12 = vadd.f32 1.0, %v972_v10 }
 0x1bd   : > { %973 = vpow2.f32 %v702_v11 }
 0x1be   : > { %975 = vrcp.f32 %v732_v12  ;;  %v649_v13 = vpop.f32.mrf.mxu2 }
 0x1bf   : > { %v650_v14 = vadd.f32 %v1172_v2, %v649_v13 }
 0x1c1   : > { %v686_v15 = vsub.f32 0.0, %v650_v14 }
 0x1c3   : > { %v974_v16 = vpop.eup %973  ;;  %v704_v17 = vmul.f32 1.442695, %v686_v15 }
 0x1c4   : > { %v976_v18 = vpop.eup %975  ;;  %v733_v19 = vadd.f32 1.0, %v974_v16 }
 0x1c5   : > { %765 = vst.msk [vmem:[%s1181_s12] sm:$0xff] %vm764_vm2, %v976_v18  ;;  %977 = vpow2.f32 %v704_v17 }
 0x1c6   : > { %979 = vrcp.f32 %v733_v19  ;;  %v651_v20 = vpop.f32.mrf.mxu2 }
 0x1c7   : > { %v652_v21 = vadd.f32 %v1172_v2, %v651_v20 }
 0x1c9   : > { %v687_v22 = vsub.f32 0.0, %v652_v21 }
 0x1cb   : > { %v978_v23 = vpop.eup %977  ;;  %v706_v24 = vmul.f32 1.442695, %v687_v22 }
 0x1cc   : > { %v980_v25 = vpop.eup %979  ;;  %v734_v26 = vadd.f32 1.0, %v978_v23 }
 0x1cd   : > { %766 = vst.msk [vmem:[%s1181_s12 + $0x8] sm:$0xff] %vm764_vm2, %v980_v25  ;;  %981 = vpow2.f32 %v706_v24 }
 0x1ce   : > { %983 = vrcp.f32 %v734_v26  ;;  %v654_v27 = vpop.f32.mrf.mxu2 }
 0x1cf   : > { %v655_v28 = vadd.f32 %v1172_v2, %v654_v27 }
 0x1d1   : > { %v688_v29 = vsub.f32 0.0, %v655_v28 }
 0x1d3   : > { %v982_v30 = vpop.eup %981  ;;  %v708_v31 = vmul.f32 1.442695, %v688_v29 }
 0x1d4   : > { %v984_v32 = vpop.eup %983  ;;  %v735_v33 = vadd.f32 1.0, %v982_v30 }
 0x1d5   : > { %767 = vst.msk [vmem:[%s1181_s12 + $0x10] sm:$0xff] %vm764_vm2, %v984_v32  ;;  %985 = vpow2.f32 %v708_v31 }
 0x1d6   : > { %987 = vrcp.f32 %v735_v33  ;;  %v656_v34 = vpop.f32.mrf.mxu2 }
 0x1d7   : > { %v657_v35 = vadd.f32 %v1172_v2, %v656_v34 }
 0x1d9   : > { %v689_v36 = vsub.f32 0.0, %v657_v35 }
 0x1db   : > { %v986_v37 = vpop.eup %985  ;;  %v710_v38 = vmul.f32 1.442695, %v689_v36 }
 0x1dc   : > { %v988_v39 = vpop.eup %987  ;;  %v736_v40 = vadd.f32 1.0, %v986_v37 }
 0x1dd   : > { %768 = vst.msk [vmem:[%s1181_s12 + $0x18] sm:$0xff] %vm764_vm2, %v988_v39  ;;  %989 = vpow2.f32 %v710_v38 }
 0x1de   : > { %991 = vrcp.f32 %v736_v40  ;;  %v659_v41 = vpop.f32.mrf.mxu2 }
 0x1df   : > { %v660_v42 = vadd.f32 %v1172_v2, %v659_v41 }
 0x1e1   : > { %v690_v43 = vsub.f32 0.0, %v660_v42 }
 0x1e3   : > { %v990_v44 = vpop.eup %989  ;;  %v712_v45 = vmul.f32 1.442695, %v690_v43 }
 0x1e4   : > { %v992_v46 = vpop.eup %991  ;;  %v737_v47 = vadd.f32 1.0, %v990_v44 }
 0x1e5   : > { %769 = vst.msk [vmem:[%s1181_s12 + $0x20] sm:$0xff] %vm764_vm2, %v992_v46  ;;  %993 = vpow2.f32 %v712_v45 }
 0x1e6   : > { %995 = vrcp.f32 %v737_v47  ;;  %v661_v48 = vpop.f32.mrf.mxu2 }
 0x1e7   : > { %v662_v49 = vadd.f32 %v1172_v2, %v661_v48 }
 0x1e9   : > { %v691_v50 = vsub.f32 0.0, %v662_v49 }
 0x1eb   : > { %v994_v51 = vpop.eup %993  ;;  %v714_v52 = vmul.f32 1.442695, %v691_v50 }
 0x1ec   : > { %v996_v53 = vpop.eup %995  ;;  %v738_v54 = vadd.f32 1.0, %v994_v51 }
 0x1ed   : > { %770 = vst.msk [vmem:[%s1181_s12 + $0x28] sm:$0xff] %vm764_vm2, %v996_v53  ;;  %997 = vpow2.f32 %v714_v52 }
 0x1ee   : > { %999 = vrcp.f32 %v738_v54  ;;  %v664_v55 = vpop.f32.mrf.mxu2 }
 0x1ef   : > { %v665_v56 = vadd.f32 %v1172_v2, %v664_v55 }
 0x1f1   : > { %v692_v57 = vsub.f32 0.0, %v665_v56 }
 0x1f3   : > { %v998_v58 = vpop.eup %997  ;;  %v716_v59 = vmul.f32 1.442695, %v692_v57 }
 0x1f4   : > { %v1000_v60 = vpop.eup %999  ;;  %v739_v61 = vadd.f32 1.0, %v998_v58 }
 0x1f5   : > { %771 = vst.msk [vmem:[%s1181_s12 + $0x30] sm:$0xff] %vm764_vm2, %v1000_v60  ;;  %1001 = vpow2.f32 %v716_v59 }
 0x1f6   : > { %1003 = vrcp.f32 %v739_v61  ;;  %v666_v62 = vpop.f32.mrf.mxu2 }
 0x1f7   : > { %v667_v63 = vadd.f32 %v1172_v2, %v666_v62 }
 0x1f9   : > { %v693_v0 = vsub.f32 0.0, %v667_v63 }
 0x1fb   : > { %v1002_v1 = vpop.eup %1001  ;;  %v718_v3 = vmul.f32 1.442695, %v693_v0 }
 0x1fc   : > { %v1004_v4 = vpop.eup %1003  ;;  %v740_v5 = vadd.f32 1.0, %v1002_v1 }
 0x1fd   : > { %772 = vst.msk [vmem:[%s1181_s12 + $0x38] sm:$0xff] %vm764_vm2, %v1004_v4  ;;  %1005 = vpow2.f32 %v718_v3 }
 0x1fe   : > { %1007 = vrcp.f32 %v740_v5  ;;  %v669_v6 = vpop.f32.mrf.mxu2 }
 0x1ff   : > { %v670_v7 = vadd.f32 %v1172_v2, %v669_v6 }
 0x201   : > { %v694_v8 = vsub.f32 0.0, %v670_v7 }
 0x203   : > { %v1006_v9 = vpop.eup %1005  ;;  %v720_v10 = vmul.f32 1.442695, %v694_v8 }
 0x204   : > { %v1008_v11 = vpop.eup %1007  ;;  %v741_v12 = vadd.f32 1.0, %v1006_v9 }
 0x205   : > { %773 = vst.msk [vmem:[%s1181_s12 + $0x40] sm:$0xff] %vm764_vm2, %v1008_v11  ;;  %1009 = vpow2.f32 %v720_v10 }
 0x206   : > { %1011 = vrcp.f32 %v741_v12  ;;  %v671_v13 = vpop.f32.mrf.mxu2 }
 0x207   : > { %v672_v14 = vadd.f32 %v1172_v2, %v671_v13 }
 0x209   : > { %v695_v15 = vsub.f32 0.0, %v672_v14 }
 0x20b   : > { %v1010_v16 = vpop.eup %1009  ;;  %v722_v17 = vmul.f32 1.442695, %v695_v15 }
 0x20c   : > { %v1012_v18 = vpop.eup %1011  ;;  %v742_v19 = vadd.f32 1.0, %v1010_v16 }
 0x20d   : > { %774 = vst.msk [vmem:[%s1181_s12 + $0x48] sm:$0xff] %vm764_vm2, %v1012_v18  ;;  %1013 = vpow2.f32 %v722_v17 }
 0x20e   : > { %1015 = vrcp.f32 %v742_v19 }
 0x213   : > { %v1014_v20 = vpop.eup %1013 }
 0x214   : > { %v1016_v21 = vpop.eup %1015  ;;  %v743_v22 = vadd.f32 1.0, %v1014_v20  ;;  %v674_v23 = vpop.f32.mrf.mxu2 }
 0x215   : > { %775 = vst.msk [vmem:[%s1181_s12 + $0x50] sm:$0xff] %vm764_vm2, %v1016_v21  ;;  %v675_v24 = vadd.f32 %v1172_v2, %v674_v23 }
 0x216   : > { %1017 = vrcp.f32 %v743_v22 }
 0x217   : > { %v696_v25 = vsub.f32 0.0, %v675_v24 }
 0x219   : > { %v724_v26 = vmul.f32 1.442695, %v696_v25 }
 0x21b   : > { %1019 = vpow2.f32 %v724_v26 }
 0x21c   : > { %v1018_v27 = vpop.eup %1017  ;;  %v676_v28 = vpop.f32.mrf.mxu2 }
 0x21d   : > { %776 = vst.msk [vmem:[%s1181_s12 + $0x58] sm:$0xff] %vm764_vm2, %v1018_v27  ;;  %v677_v29 = vadd.f32 %v1172_v2, %v676_v28 }
 0x21f   : > { %v697_v30 = vsub.f32 0.0, %v677_v29 }
 0x221   : > { %v1020_v31 = vpop.eup %1019  ;;  %v726_v32 = vmul.f32 1.442695, %v697_v30 }
 0x222   : > { %v744_v33 = vadd.f32 1.0, %v1020_v31 }
 0x223   : > { %1021 = vpow2.f32 %v726_v32 }
 0x224   : > { %1023 = vrcp.f32 %v744_v33  ;;  %v679_v34 = vpop.f32.mrf.mxu3 }
 0x225   : > { %v680_v35 = vadd.f32 %v1172_v2, %v679_v34 }
 0x227   : > { %v698_v36 = vsub.f32 0.0, %v680_v35 }
 0x229   : > { %v1022_v37 = vpop.eup %1021  ;;  %v728_v38 = vmul.f32 1.442695, %v698_v36 }
 0x22a   : > { %v1024_v39 = vpop.eup %1023  ;;  %v745_v40 = vadd.f32 1.0, %v1022_v37 }
 0x22b   : > { %777 = vst.msk [vmem:[%s1181_s12 + $0x60] sm:$0xff] %vm764_vm2, %v1024_v39  ;;  %1025 = vpow2.f32 %v728_v38 }
 0x22c   : > { %1027 = vrcp.f32 %v745_v40  ;;  %v681_v41 = vpop.f32.mrf.mxu3 }
 0x22d   : > { %v682_v42 = vadd.f32 %v1172_v2, %v681_v41 }
 0x22f   : > { %v699_v43 = vsub.f32 0.0, %v682_v42 }
 0x231   : > { %v1026_v44 = vpop.eup %1025  ;;  %v730_v45 = vmul.f32 1.442695, %v699_v43 }
 0x232   : > { %v1028_v46 = vpop.eup %1027  ;;  %v746_v47 = vadd.f32 1.0, %v1026_v44 }
 0x233   : > { %778 = vst.msk [vmem:[%s1181_s12 + $0x68] sm:$0xff] %vm764_vm2, %v1028_v46  ;;  %1029 = vpow2.f32 %v730_v45 }
 0x234   : > { %1031 = vrcp.f32 %v746_v47 }
 0x239   : > { %v1030_v48 = vpop.eup %1029 }
 0x23a   : > { %v1032_v49 = vpop.eup %1031  ;;  %v747_v50 = vadd.f32 1.0, %v1030_v48 }
 0x23b   : > { %779 = vst.msk [vmem:[%s1181_s12 + $0x70] sm:$0xff] %vm764_vm2, %v1032_v49 }
 0x23c   : > { %1033 = vrcp.f32 %v747_v50 }
 0x242   : > { %v1034_v51 = vpop.eup %1033 }
 0x243   : > { %780 = vst.msk [vmem:[%s1181_s12 + $0x78] sm:$0xff] %vm764_vm2, %v1034_v51 }
 0x244 PF: > { %s17_s24 = sadd.s32 1, %s1041_s24  }
 0x245   : > { %p14_p4 = scmp.ge.s32.totalorder %s17_s24, 4  }
 0x247   :  { %16 = sbr.rel (!%p14_p4) target bundleno = 1 (0x1), region = 78 }

</bundles_post_ra>
